<compile_context>
chip_gen: v5e
topology: v5e:2x2
jax: 0.10.0
libtpu: 0.0.40
codegen_flags: <defaults>
</compile_context>

<pallas_src>
import functools

import jax
import jax.numpy as jnp
from jax.experimental import pallas as pl
from jax.experimental.pallas import tpu as pltpu

_LANES = 128


def _round_up(x: int, m: int) -> int:
    return ((x + m - 1) // m) * m


def _aag_kernel(x_ref, w_ref, b_ref, masked_ref, y_ref):
    # x_ref:      (C_in,  rows, 128)  VMEM  -- pixels dense on (sublanes, lanes)
    # w_ref:      (C_out, C_in)       SMEM  -- 1x1 conv weight (scalars)
    # b_ref:      (C_out,)            SMEM  -- bias (scalars)
    # masked_ref: (C_in,  rows, 128)  VMEM
    # y_ref:      (C_out, rows, 128)  VMEM
    c_out, c_in = w_ref.shape  # static

    # --- 1x1 conv as unrolled VPU FMAs on dense per-channel tiles. ---
    # Input-channel loop is outermost so each channel tile is loaded once and
    # only the C_out logit accumulators stay live.
    logits = [None] * c_out
    for c in range(c_in):
        xc = x_ref[c].astype(jnp.float32)                 # (rows, 128)
        for o in range(c_out):
            term = xc * w_ref[o, c]
            logits[o] = term + b_ref[o] if c == 0 else logits[o] + term

    # --- Numerically-stable softmax over channels, fully unrolled (no
    #     cross-lane / cross-sublane reductions). ---
    m = logits[0]
    for o in range(1, c_out):
        m = jnp.maximum(m, logits[o])
    exps = [jnp.exp(l - m) for l in logits]               # EUP
    denom = exps[0]
    for o in range(1, c_out):
        denom = denom + exps[o]
    inv = pl.reciprocal(denom, approx=True)               # EUP slot
    inv = inv * (2.0 - denom * inv)                       # one Newton step
    ys = [e * inv for e in exps]                          # (rows, 128) each

    # attention = sum over foreground classes = 1 - background probability.
    # (Also correct for c_out == 1: attn ~ 0, matching an empty foreground sum.)
    attn = 1.0 - ys[0]

    # Dense, full-width, per-channel stores (no sublane-pack concatenate).
    for o in range(c_out):
        y_ref[o] = ys[o].astype(y_ref.dtype)
    # Re-read x from VMEM (cheap: 3 vld slots/cycle) instead of keeping the
    # conv-time values live across the softmax.
    for c in range(c_in):
        masked_ref[c] = (x_ref[c].astype(jnp.float32) * attn).astype(masked_ref.dtype)


@functools.partial(jax.jit, static_argnames=("rows_per_tile",))
def adversarial_attention_gate(x_nchw, weight, bias, *, rows_per_tile=256):
    """x_nchw: (B, C_in, H, W); weight: (C_out, C_in); bias: (C_out,)."""
    B, C_in, H, W = x_nchw.shape
    C_out = weight.shape[0]
    HW = H * W
    out_dtype = x_nchw.dtype

    # Free reshape: flatten pixels, then split the pixel axis into
    # (rows, 128 lanes).  Only pads (one HBM copy) when H*W % 128 != 0.
    hw128 = _round_up(HW, _LANES)
    x_flat = x_nchw.reshape(B, C_in, HW)
    if hw128 != HW:
        x_flat = jnp.pad(x_flat, ((0, 0), (0, 0), (0, hw128 - HW)))
    R = hw128 // _LANES
    x4 = x_flat.reshape(B, C_in, R, _LANES)

    # Tile rows: use the full extent when it fits, otherwise a large multiple
    # of 8 sublanes (256 rows -> 32768 pixels / ~1.4 MB per grid step).
    if R <= rows_per_tile:
        rows_tile = R                      # full dim (allowed even if < 8)
    else:
        rows_tile = max(8, (rows_per_tile // 8) * 8)
    grid = (B, pl.cdiv(R, rows_tile))      # partial tail tiles handled by Pallas

    w = weight.astype(jnp.float32)         # (C_out, C_in) -> SMEM scalars
    b = bias.astype(jnp.float32)           # (C_out,)      -> SMEM scalars

    n_pix = B * hw128
    itemsize = jnp.dtype(out_dtype).itemsize
    cost = pl.CostEstimate(
        flops=n_pix * (2 * C_in * C_out + 6 * C_out + C_in + 4),
        transcendentals=n_pix * (C_out + 1),
        bytes_accessed=itemsize * (2 * B * C_in * hw128 + B * C_out * hw128),
    )

    masked4, y4 = pl.pallas_call(
        _aag_kernel,
        out_shape=(
            jax.ShapeDtypeStruct((B, C_in, R, _LANES), out_dtype),
            jax.ShapeDtypeStruct((B, C_out, R, _LANES), out_dtype),
        ),
        grid_spec=pltpu.PrefetchScalarGridSpec(
            num_scalar_prefetch=0,
            grid=grid,
            in_specs=[
                pl.BlockSpec((None, C_in, rows_tile, _LANES),
                             lambda bi, ri: (bi, 0, ri, 0)),
                pl.BlockSpec(memory_space=pltpu.MemorySpace.SMEM),
                pl.BlockSpec(memory_space=pltpu.MemorySpace.SMEM),
            ],
            out_specs=[
                pl.BlockSpec((None, C_in, rows_tile, _LANES),
                             lambda bi, ri: (bi, 0, ri, 0)),
                pl.BlockSpec((None, C_out, rows_tile, _LANES),
                             lambda bi, ri: (bi, 0, ri, 0)),
            ],
        ),
        compiler_params=pltpu.CompilerParams(
            dimension_semantics=("parallel", "parallel")),
        cost_estimate=cost,
    )(x4, w, b)

    # Drop lane padding (no-op slice when hw128 == HW); reshapes are free.
    masked_x = masked4.reshape(B, C_in, hw128)[:, :, :HW].reshape(B, C_in, H, W)
    y_hat = y4.reshape(B, C_out, hw128)[:, :, :HW].reshape(B, C_out, H, W)
    return masked_x, y_hat


def _reference(x_nchw, weight, bias):
    # pure-JAX reference of the PyTorch forward (NCHW)
    x_prime = jnp.einsum("bchw,oc->bohw", x_nchw, weight) + bias[None, :, None, None]
    y_hat = jax.nn.softmax(x_prime, axis=1)
    attn = jnp.sum(y_hat[:, 1:, :, :], axis=1, keepdims=True)
    return x_nchw * attn, y_hat


if __name__ == "__main__":
    key = jax.random.PRNGKey(0)
    kx, kw, kb = jax.random.split(key, 3)

    B, C_in, H, W = 2, 4, 16, 16
    C_out = 3  # number of segmentation classes (channel 0 = background)

    x = jax.random.normal(kx, (B, C_in, H, W), dtype=jnp.float32)
    weight = jax.random.normal(kw, (C_out, C_in), dtype=jnp.float32) * 0.1
    bias = jax.random.normal(kb, (C_out,), dtype=jnp.float32) * 0.01

    masked_x, y_hat = adversarial_attention_gate(x, weight, bias)
    jax.block_until_ready((masked_x, y_hat))

    ref_masked, ref_y = _reference(x, weight, bias)
    assert jnp.allclose(masked_x, ref_masked, atol=1e-5, rtol=1e-5)
    assert jnp.allclose(y_hat, ref_y, atol=1e-5, rtol=1e-5)

    print("KERNEL_OK")
</pallas_src>

<mosaic_0001>
module attributes {stable_mosaic.version = 11 : i64} {
  func.func @_aag_kernel(%arg0: i32, %arg1: i32, %arg2: memref<1x4x2x128xf32, #tpu.memory_space<vmem>>, %arg3: memref<3x4xf32, #tpu.memory_space<smem>>, %arg4: memref<3xf32, #tpu.memory_space<smem>>, %arg5: memref<1x4x2x128xf32, #tpu.memory_space<vmem>>, %arg6: memref<1x3x2x128xf32, #tpu.memory_space<vmem>>) attributes {dimension_semantics = [#tpu.dimension_semantics<parallel>, #tpu.dimension_semantics<parallel>], iteration_bounds = array<i64: 2, 1>, scalar_prefetch = 0 : i64, scratch_operands = 0 : i64, tpu.core_type = #tpu.core_type<tc>, window_params = [{transform_indices = @transform_0, window_bounds = array<i64: 1, 4, 2, 128>}, {transform_indices = @transform_1, window_bounds = array<i64: 3, 4>}, {transform_indices = @transform_2, window_bounds = array<i64: 3>}, {transform_indices = @transform_3, window_bounds = array<i64: 1, 4, 2, 128>}, {transform_indices = @transform_4, window_bounds = array<i64: 1, 3, 2, 128>}]} {
    %c0 = arith.constant 0 : index
    %c0_0 = arith.constant 0 : index
    %c0_1 = arith.constant 0 : index
    %c0_2 = arith.constant 0 : index
    %0 = vector.load %arg2[%c0, %c0_0, %c0_1, %c0_2] : memref<1x4x2x128xf32, #tpu.memory_space<vmem>>, vector<1x1x2x128xf32>
    %1 = vector.shape_cast %0 : vector<1x1x2x128xf32> to vector<2x128xf32>
    %c0_3 = arith.constant 0 : index
    %c0_4 = arith.constant 0 : index
    %2 = memref.load %arg3[%c0_3, %c0_4] : memref<3x4xf32, #tpu.memory_space<smem>>
    %3 = vector.broadcast %2 : f32 to vector<2x128xf32>
    %4 = arith.mulf %1, %3 : vector<2x128xf32>
    %c0_5 = arith.constant 0 : index
    %5 = memref.load %arg4[%c0_5] : memref<3xf32, #tpu.memory_space<smem>>
    %6 = vector.broadcast %5 : f32 to vector<2x128xf32>
    %7 = arith.addf %4, %6 : vector<2x128xf32>
    %c1 = arith.constant 1 : index
    %c0_6 = arith.constant 0 : index
    %8 = memref.load %arg3[%c1, %c0_6] : memref<3x4xf32, #tpu.memory_space<smem>>
    %9 = vector.broadcast %8 : f32 to vector<2x128xf32>
    %10 = arith.mulf %1, %9 : vector<2x128xf32>
    %c1_7 = arith.constant 1 : index
    %11 = memref.load %arg4[%c1_7] : memref<3xf32, #tpu.memory_space<smem>>
    %12 = vector.broadcast %11 : f32 to vector<2x128xf32>
    %13 = arith.addf %10, %12 : vector<2x128xf32>
    %c2 = arith.constant 2 : index
    %c0_8 = arith.constant 0 : index
    %14 = memref.load %arg3[%c2, %c0_8] : memref<3x4xf32, #tpu.memory_space<smem>>
    %15 = vector.broadcast %14 : f32 to vector<2x128xf32>
    %16 = arith.mulf %1, %15 : vector<2x128xf32>
    %c2_9 = arith.constant 2 : index
    %17 = memref.load %arg4[%c2_9] : memref<3xf32, #tpu.memory_space<smem>>
    %18 = vector.broadcast %17 : f32 to vector<2x128xf32>
    %19 = arith.addf %16, %18 : vector<2x128xf32>
    %c0_10 = arith.constant 0 : index
    %c1_11 = arith.constant 1 : index
    %c0_12 = arith.constant 0 : index
    %c0_13 = arith.constant 0 : index
    %20 = vector.load %arg2[%c0_10, %c1_11, %c0_12, %c0_13] : memref<1x4x2x128xf32, #tpu.memory_space<vmem>>, vector<1x1x2x128xf32>
    %21 = vector.shape_cast %20 : vector<1x1x2x128xf32> to vector<2x128xf32>
    %c0_14 = arith.constant 0 : index
    %c1_15 = arith.constant 1 : index
    %22 = memref.load %arg3[%c0_14, %c1_15] : memref<3x4xf32, #tpu.memory_space<smem>>
    %23 = vector.broadcast %22 : f32 to vector<2x128xf32>
    %24 = arith.mulf %21, %23 : vector<2x128xf32>
    %25 = arith.addf %7, %24 : vector<2x128xf32>
    %c1_16 = arith.constant 1 : index
    %c1_17 = arith.constant 1 : index
    %26 = memref.load %arg3[%c1_16, %c1_17] : memref<3x4xf32, #tpu.memory_space<smem>>
    %27 = vector.broadcast %26 : f32 to vector<2x128xf32>
    %28 = arith.mulf %21, %27 : vector<2x128xf32>
    %29 = arith.addf %13, %28 : vector<2x128xf32>
    %c2_18 = arith.constant 2 : index
    %c1_19 = arith.constant 1 : index
    %30 = memref.load %arg3[%c2_18, %c1_19] : memref<3x4xf32, #tpu.memory_space<smem>>
    %31 = vector.broadcast %30 : f32 to vector<2x128xf32>
    %32 = arith.mulf %21, %31 : vector<2x128xf32>
    %33 = arith.addf %19, %32 : vector<2x128xf32>
    %c0_20 = arith.constant 0 : index
    %c2_21 = arith.constant 2 : index
    %c0_22 = arith.constant 0 : index
    %c0_23 = arith.constant 0 : index
    %34 = vector.load %arg2[%c0_20, %c2_21, %c0_22, %c0_23] : memref<1x4x2x128xf32, #tpu.memory_space<vmem>>, vector<1x1x2x128xf32>
    %35 = vector.shape_cast %34 : vector<1x1x2x128xf32> to vector<2x128xf32>
    %c0_24 = arith.constant 0 : index
    %c2_25 = arith.constant 2 : index
    %36 = memref.load %arg3[%c0_24, %c2_25] : memref<3x4xf32, #tpu.memory_space<smem>>
    %37 = vector.broadcast %36 : f32 to vector<2x128xf32>
    %38 = arith.mulf %35, %37 : vector<2x128xf32>
    %39 = arith.addf %25, %38 : vector<2x128xf32>
    %c1_26 = arith.constant 1 : index
    %c2_27 = arith.constant 2 : index
    %40 = memref.load %arg3[%c1_26, %c2_27] : memref<3x4xf32, #tpu.memory_space<smem>>
    %41 = vector.broadcast %40 : f32 to vector<2x128xf32>
    %42 = arith.mulf %35, %41 : vector<2x128xf32>
    %43 = arith.addf %29, %42 : vector<2x128xf32>
    %c2_28 = arith.constant 2 : index
    %c2_29 = arith.constant 2 : index
    %44 = memref.load %arg3[%c2_28, %c2_29] : memref<3x4xf32, #tpu.memory_space<smem>>
    %45 = vector.broadcast %44 : f32 to vector<2x128xf32>
    %46 = arith.mulf %35, %45 : vector<2x128xf32>
    %47 = arith.addf %33, %46 : vector<2x128xf32>
    %c0_30 = arith.constant 0 : index
    %c3 = arith.constant 3 : index
    %c0_31 = arith.constant 0 : index
    %c0_32 = arith.constant 0 : index
    %48 = vector.load %arg2[%c0_30, %c3, %c0_31, %c0_32] : memref<1x4x2x128xf32, #tpu.memory_space<vmem>>, vector<1x1x2x128xf32>
    %49 = vector.shape_cast %48 : vector<1x1x2x128xf32> to vector<2x128xf32>
    %c0_33 = arith.constant 0 : index
    %c3_34 = arith.constant 3 : index
    %50 = memref.load %arg3[%c0_33, %c3_34] : memref<3x4xf32, #tpu.memory_space<smem>>
    %51 = vector.broadcast %50 : f32 to vector<2x128xf32>
    %52 = arith.mulf %49, %51 : vector<2x128xf32>
    %53 = arith.addf %39, %52 : vector<2x128xf32>
    %c1_35 = arith.constant 1 : index
    %c3_36 = arith.constant 3 : index
    %54 = memref.load %arg3[%c1_35, %c3_36] : memref<3x4xf32, #tpu.memory_space<smem>>
    %55 = vector.broadcast %54 : f32 to vector<2x128xf32>
    %56 = arith.mulf %49, %55 : vector<2x128xf32>
    %57 = arith.addf %43, %56 : vector<2x128xf32>
    %c2_37 = arith.constant 2 : index
    %c3_38 = arith.constant 3 : index
    %58 = memref.load %arg3[%c2_37, %c3_38] : memref<3x4xf32, #tpu.memory_space<smem>>
    %59 = vector.broadcast %58 : f32 to vector<2x128xf32>
    %60 = arith.mulf %49, %59 : vector<2x128xf32>
    %61 = arith.addf %47, %60 : vector<2x128xf32>
    %62 = arith.maximumf %53, %57 : vector<2x128xf32>
    %63 = arith.maximumf %62, %61 : vector<2x128xf32>
    %64 = arith.subf %53, %63 : vector<2x128xf32>
    %65 = math.exp %64 : vector<2x128xf32>
    %66 = arith.subf %57, %63 : vector<2x128xf32>
    %67 = math.exp %66 : vector<2x128xf32>
    %68 = arith.subf %61, %63 : vector<2x128xf32>
    %69 = math.exp %68 : vector<2x128xf32>
    %70 = arith.addf %65, %67 : vector<2x128xf32>
    %71 = arith.addf %70, %69 : vector<2x128xf32>
    %72 = tpu.reciprocal %71 {approx = true} : vector<2x128xf32> -> vector<2x128xf32>
    %73 = arith.mulf %71, %72 : vector<2x128xf32>
    %cst = arith.constant 2.000000e+00 : f32
    %74 = vector.broadcast %cst : f32 to vector<2x128xf32>
    %75 = arith.subf %74, %73 : vector<2x128xf32>
    %76 = arith.mulf %72, %75 : vector<2x128xf32>
    %77 = arith.mulf %65, %76 : vector<2x128xf32>
    %78 = arith.mulf %67, %76 : vector<2x128xf32>
    %79 = arith.mulf %69, %76 : vector<2x128xf32>
    %cst_39 = arith.constant 1.000000e+00 : f32
    %80 = vector.broadcast %cst_39 : f32 to vector<2x128xf32>
    %81 = arith.subf %80, %77 : vector<2x128xf32>
    %c0_40 = arith.constant 0 : index
    %c0_41 = arith.constant 0 : index
    %c0_42 = arith.constant 0 : index
    %c0_43 = arith.constant 0 : index
    %82 = vector.load %arg6[%c0_40, %c0_41, %c0_42, %c0_43] : memref<1x3x2x128xf32, #tpu.memory_space<vmem>>, vector<1x1x2x128xf32>
    %83 = vector.shape_cast %82 : vector<1x1x2x128xf32> to vector<2x128xf32>
    %84 = vector.shape_cast %77 : vector<2x128xf32> to vector<1x1x2x128xf32>
    tpu.vector_store %arg6[%c0_40, %c0_41, %c0_42, %c0_43], %84 {strides = array<i32>} : memref<1x3x2x128xf32, #tpu.memory_space<vmem>>, vector<1x1x2x128xf32>,
    %c0_44 = arith.constant 0 : index
    %c1_45 = arith.constant 1 : index
    %c0_46 = arith.constant 0 : index
    %c0_47 = arith.constant 0 : index
    %85 = vector.load %arg6[%c0_44, %c1_45, %c0_46, %c0_47] : memref<1x3x2x128xf32, #tpu.memory_space<vmem>>, vector<1x1x2x128xf32>
    %86 = vector.shape_cast %85 : vector<1x1x2x128xf32> to vector<2x128xf32>
    %87 = vector.shape_cast %78 : vector<2x128xf32> to vector<1x1x2x128xf32>
    tpu.vector_store %arg6[%c0_44, %c1_45, %c0_46, %c0_47], %87 {strides = array<i32>} : memref<1x3x2x128xf32, #tpu.memory_space<vmem>>, vector<1x1x2x128xf32>,
    %c0_48 = arith.constant 0 : index
    %c2_49 = arith.constant 2 : index
    %c0_50 = arith.constant 0 : index
    %c0_51 = arith.constant 0 : index
    %88 = vector.load %arg6[%c0_48, %c2_49, %c0_50, %c0_51] : memref<1x3x2x128xf32, #tpu.memory_space<vmem>>, vector<1x1x2x128xf32>
    %89 = vector.shape_cast %88 : vector<1x1x2x128xf32> to vector<2x128xf32>
    %90 = vector.shape_cast %79 : vector<2x128xf32> to vector<1x1x2x128xf32>
    tpu.vector_store %arg6[%c0_48, %c2_49, %c0_50, %c0_51], %90 {strides = array<i32>} : memref<1x3x2x128xf32, #tpu.memory_space<vmem>>, vector<1x1x2x128xf32>,
    %c0_52 = arith.constant 0 : index
    %c0_53 = arith.constant 0 : index
    %c0_54 = arith.constant 0 : index
    %c0_55 = arith.constant 0 : index
    %91 = vector.load %arg2[%c0_52, %c0_53, %c0_54, %c0_55] : memref<1x4x2x128xf32, #tpu.memory_space<vmem>>, vector<1x1x2x128xf32>
    %92 = vector.shape_cast %91 : vector<1x1x2x128xf32> to vector<2x128xf32>
    %93 = arith.mulf %92, %81 : vector<2x128xf32>
    %c0_56 = arith.constant 0 : index
    %c0_57 = arith.constant 0 : index
    %c0_58 = arith.constant 0 : index
    %c0_59 = arith.constant 0 : index
    %94 = vector.load %arg5[%c0_56, %c0_57, %c0_58, %c0_59] : memref<1x4x2x128xf32, #tpu.memory_space<vmem>>, vector<1x1x2x128xf32>
    %95 = vector.shape_cast %94 : vector<1x1x2x128xf32> to vector<2x128xf32>
    %96 = vector.shape_cast %93 : vector<2x128xf32> to vector<1x1x2x128xf32>
    tpu.vector_store %arg5[%c0_56, %c0_57, %c0_58, %c0_59], %96 {strides = array<i32>} : memref<1x4x2x128xf32, #tpu.memory_space<vmem>>, vector<1x1x2x128xf32>,
    %c0_60 = arith.constant 0 : index
    %c1_61 = arith.constant 1 : index
    %c0_62 = arith.constant 0 : index
    %c0_63 = arith.constant 0 : index
    %97 = vector.load %arg2[%c0_60, %c1_61, %c0_62, %c0_63] : memref<1x4x2x128xf32, #tpu.memory_space<vmem>>, vector<1x1x2x128xf32>
    %98 = vector.shape_cast %97 : vector<1x1x2x128xf32> to vector<2x128xf32>
    %99 = arith.mulf %98, %81 : vector<2x128xf32>
    %c0_64 = arith.constant 0 : index
    %c1_65 = arith.constant 1 : index
    %c0_66 = arith.constant 0 : index
    %c0_67 = arith.constant 0 : index
    %100 = vector.load %arg5[%c0_64, %c1_65, %c0_66, %c0_67] : memref<1x4x2x128xf32, #tpu.memory_space<vmem>>, vector<1x1x2x128xf32>
    %101 = vector.shape_cast %100 : vector<1x1x2x128xf32> to vector<2x128xf32>
    %102 = vector.shape_cast %99 : vector<2x128xf32> to vector<1x1x2x128xf32>
    tpu.vector_store %arg5[%c0_64, %c1_65, %c0_66, %c0_67], %102 {strides = array<i32>} : memref<1x4x2x128xf32, #tpu.memory_space<vmem>>, vector<1x1x2x128xf32>,
    %c0_68 = arith.constant 0 : index
    %c2_69 = arith.constant 2 : index
    %c0_70 = arith.constant 0 : index
    %c0_71 = arith.constant 0 : index
    %103 = vector.load %arg2[%c0_68, %c2_69, %c0_70, %c0_71] : memref<1x4x2x128xf32, #tpu.memory_space<vmem>>, vector<1x1x2x128xf32>
    %104 = vector.shape_cast %103 : vector<1x1x2x128xf32> to vector<2x128xf32>
    %105 = arith.mulf %104, %81 : vector<2x128xf32>
    %c0_72 = arith.constant 0 : index
    %c2_73 = arith.constant 2 : index
    %c0_74 = arith.constant 0 : index
    %c0_75 = arith.constant 0 : index
    %106 = vector.load %arg5[%c0_72, %c2_73, %c0_74, %c0_75] : memref<1x4x2x128xf32, #tpu.memory_space<vmem>>, vector<1x1x2x128xf32>
    %107 = vector.shape_cast %106 : vector<1x1x2x128xf32> to vector<2x128xf32>
    %108 = vector.shape_cast %105 : vector<2x128xf32> to vector<1x1x2x128xf32>
    tpu.vector_store %arg5[%c0_72, %c2_73, %c0_74, %c0_75], %108 {strides = array<i32>} : memref<1x4x2x128xf32, #tpu.memory_space<vmem>>, vector<1x1x2x128xf32>,
    %c0_76 = arith.constant 0 : index
    %c3_77 = arith.constant 3 : index
    %c0_78 = arith.constant 0 : index
    %c0_79 = arith.constant 0 : index
    %109 = vector.load %arg2[%c0_76, %c3_77, %c0_78, %c0_79] : memref<1x4x2x128xf32, #tpu.memory_space<vmem>>, vector<1x1x2x128xf32>
    %110 = vector.shape_cast %109 : vector<1x1x2x128xf32> to vector<2x128xf32>
    %111 = arith.mulf %110, %81 : vector<2x128xf32>
    %c0_80 = arith.constant 0 : index
    %c3_81 = arith.constant 3 : index
    %c0_82 = arith.constant 0 : index
    %c0_83 = arith.constant 0 : index
    %112 = vector.load %arg5[%c0_80, %c3_81, %c0_82, %c0_83] : memref<1x4x2x128xf32, #tpu.memory_space<vmem>>, vector<1x1x2x128xf32>
    %113 = vector.shape_cast %112 : vector<1x1x2x128xf32> to vector<2x128xf32>
    %114 = vector.shape_cast %111 : vector<2x128xf32> to vector<1x1x2x128xf32>
    tpu.vector_store %arg5[%c0_80, %c3_81, %c0_82, %c0_83], %114 {strides = array<i32>} : memref<1x4x2x128xf32, #tpu.memory_space<vmem>>, vector<1x1x2x128xf32>,
    return
  }
  func.func @transform_0(%arg0: i32, %arg1: i32) -> (i32, i32, i32, i32) {
    %c0_i32 = arith.constant 0 : i32
    %c0_i32_0 = arith.constant 0 : i32
    %c0_i32_1 = arith.constant 0 : i32
    return %arg0, %c0_i32, %arg1, %c0_i32_0 : i32, i32, i32, i32
  }
  func.func @transform_1(%arg0: i32, %arg1: i32) -> (i32, i32) {
    %c0_i32 = arith.constant 0 : i32
    %c0_i32_0 = arith.constant 0 : i32
    %c0_i32_1 = arith.constant 0 : i32
    return %c0_i32, %c0_i32_0 : i32, i32
  }
  func.func @transform_2(%arg0: i32, %arg1: i32) -> i32 {
    %c0_i32 = arith.constant 0 : i32
    %c0_i32_0 = arith.constant 0 : i32
    return %c0_i32 : i32
  }
  func.func @transform_3(%arg0: i32, %arg1: i32) -> (i32, i32, i32, i32) {
    %c0_i32 = arith.constant 0 : i32
    %c0_i32_0 = arith.constant 0 : i32
    %c0_i32_1 = arith.constant 0 : i32
    return %arg0, %c0_i32, %arg1, %c0_i32_0 : i32, i32, i32, i32
  }
  func.func @transform_4(%arg0: i32, %arg1: i32) -> (i32, i32, i32, i32) {
    %c0_i32 = arith.constant 0 : i32
    %c0_i32_0 = arith.constant 0 : i32
    %c0_i32_1 = arith.constant 0 : i32
    return %arg0, %c0_i32, %arg1, %c0_i32_0 : i32, i32, i32, i32
  }
}

</mosaic_0001>

<bundles_post_ra>
// kernel: adversarial_attention_gate.1
= control target key start
LH: loop header
LB: loop body
LE: loop exit
PB: predicated region body
PF: predicated region fallthrough
CT: control target
= control target key end

     0   :  { %10 = vsyncpa [#allocation3], 0  ;;  %s796_s0 = inlined_call_operand.vmem [shape: f32[2,4,2,128], index: 0, kind: input, shape index: {}]   ;;  %s797_s1 = inlined_call_operand.vmem [shape: f32[3,4], index: 1, kind: input, shape index: {}]   ;;  %s798_s2 = inlined_call_operand.vmem [shape: f32[3], index: 2, kind: input, shape index: {}]   ;;  %s799_s3 = inlined_call_operand.vmem [shape: f32[2,4,2,128], index: 3, kind: output, shape index: {0}]   ;;  %s800_s4 = inlined_call_operand.vmem [shape: f32[2,3,2,128], index: 4, kind: output, shape index: {1}]  }
   0x1   :  { %11 = vsyncpa [#allocation5], 0  ;;  %s717_s15 = smov 0   ;;  %s719_s16 = smov 0  }
   0x2   :  { %s721_s17 = smov 0  }
   0x3 LB: > { %s532_s18 = sadd.s32 4294967295, %s688_s17   ;;  %s29_s19 = sadd.s32 1, %s684_s16  ;;  %s688_s17 = sphi %s721_s17, %s17_s17   ;;  %s684_s16 = sphi %s719_s16, %s803_s16   ;;  %s680_s15 = sphi %s717_s15, %s802_s15  }
   0x4   : > { %p31_p0 = scmp.ge.s32.totalorder %s29_s19, 2  ;;  %p534_p1 = scmp.ge.s32.totalorder %s688_s17, 1 }
   0x5   : > { %p160_p2 = scmp.lt.s32.totalorder %s688_s17, 3  ;;  %p738_p4 = scmp.eq.s32.totalorder %s532_s18, 0 }
   0x6   : > { %s805_s19 = smov (%p31_p0, %s29_s19), 0  ;;  %s172_s23 = sshll.u32 %s797_s1, 4  ;;  %s173_s23 = int_to_ptr.vmem [resolvable:$true] %s172_s23 }
   0x7   : > { %p161_p3 = pnand %p534_p1, %p160_p2  ;;  %s182_s26 = sshll.u32 %s798_s2, 4  ;;  %s183_s26 = int_to_ptr.vmem [resolvable:$true] %s182_s26 }
   0x8   : > { %s690_s27 = smov [#allocation2]   ;;  %s691_s28 = smov [#allocation4]  }
   0x9   : > { %p583_p5 = pneg %p161_p3 }
   0xa   : > { %206 = sbr.rel (%p161_p3) target bundleno = 87 (0x57), region = 32 }
   0xb   : > { %p584_p6 = pnand %p738_p4, %p583_p5 }
   0xd   : > { %586 = dma.vmem_to_smem (!%p584_p6), %s173_s23, 64, %s690_s27, [#allocation3]  }
   0xe   : > { %589 = dma.vmem_to_smem (!%p584_p6), %s183_s26, 16, %s691_s28, [#allocation5]  }
   0xf   : > { %671 = dma.done.wait (%p738_p4), [#allocation3], 64  }
  0x10   : > { %673 = vsyncadd (%p738_p4), [#allocation3], 4294967232 }
  0x11   : > { %675 = dma.done.wait (%p738_p4), [#allocation5], 16  }
  0x12   : > { %677 = vsyncadd (%p738_p4), [#allocation5], 4294967280 }
  0x13   : > { %218 = sfence }
  0x14   : > { %p253_p7 = scmp.lt.s32.totalorder %s680_s15, 1  ;;  %s278_s29 = sld [smem:[#allocation2]] }
  0x15   : > { %s281_s30 = sld [smem:[#allocation4]] }
  0x16   : > { %s807_s15 = smov (!%p253_p7, %s680_s15), 1  ;;  %s546_s5 = sld [smem:[#allocation2 + $0x80]] }
  0x17   : > { %s572_s6 = sshll.u32 %s807_s15, 3  ;;  %s547_s10 = sld [smem:[#allocation4 + $0x1]] }
  0x18   : > { %s768_s9 = scalar_lea.vmem %s796_s0, %s572_s6  ;;  %s548_s11 = sld [smem:[#allocation2 + $0x100]] }
  0x19   : > { %v277_v0 = vld [vmem:[%s768_s9] sm:$0x3]  ;;  %s549_s12 = sld [smem:[#allocation4 + $0x2]]  ;;  %v550_v8 = vld [vmem:[%s768_s9 + $0x2] sm:$0x3]  ;;  %s574_s26 = smul.u32 6, %s807_s15 }
  0x1a   : > { %v279_v1 = vstv %s278_s29  ;;  %s551_s13 = sld [smem:[#allocation2 + $0x1]]  ;;  %v554_v17 = vld [vmem:[%s768_s9 + $0x4] sm:$0x3]  ;;  %v558_v26 = vld [vmem:[%s768_s9 + $0x6] sm:$0x3]  ;;  %s268_s7 = scalar_lea.vmem %s799_s3, %s572_s6 }
  0x1b   : > { %v280_v2 = vmul.f32 %v279_v1, %v277_v0  ;;  %s552_s14 = sld [smem:[#allocation2 + $0x81]]  ;;  %v282_v4 = vstv %s281_s30  ;;  %s276_s29 = scalar_lea.vmem %s800_s4, %s574_s26  ;;  %v364_v63 = vld [vmem:[%s768_s9] sm:$0x3]  ;;  %v566_v1 = vld [vmem:[%s768_s9 + $0x4] sm:$0x3] }
  0x1c   : > { %v285_v3 = vstv %s546_s5  ;;  %s553_s18 = sld [smem:[#allocation2 + $0x101]] }
  0x1d   : > { %v286_v5 = vmul.f32 %v285_v3, %v277_v0  ;;  %v288_v6 = vstv %s547_s10  ;;  %s555_s20 = sld [smem:[#allocation2 + $0x2]]  ;;  %v283_v9 = vadd.f32 %v282_v4, %v280_v2  ;;  %v568_v3 = vld [vmem:[%s768_s9 + $0x6] sm:$0x3] }
  0x1e   : > { %v291_v7 = vstv %s548_s11  ;;  %s556_s21 = sld [smem:[#allocation2 + $0x82]] }
  0x1f   : > { %v292_v10 = vmul.f32 %v291_v7, %v277_v0  ;;  %v294_v11 = vstv %s549_s12  ;;  %s557_s22 = sld [smem:[#allocation2 + $0x102]]  ;;  %v289_v12 = vadd.f32 %v288_v6, %v286_v5  ;;  %v564_v0 = vld [vmem:[%s768_s9 + $0x2] sm:$0x3] }
  0x20   : > { %v299_v13 = vstv %s551_s13  ;;  %s559_s23 = sld [smem:[#allocation2 + $0x3]] }
  0x21   : > { %v295_v14 = vadd.f32 %v294_v11, %v292_v10  ;;  %v300_v15 = vmul.f32 %v550_v8, %v299_v13  ;;  %v303_v16 = vstv %s552_s14  ;;  %s560_s24 = sld [smem:[#allocation2 + $0x83]] }
  0x22   : > { %v304_v18 = vmul.f32 %v550_v8, %v303_v16  ;;  %v307_v19 = vstv %s553_s18  ;;  %s561_s25 = sld [smem:[#allocation2 + $0x103]] }
  0x23   : > { %v301_v20 = vadd.f32 %v300_v15, %v283_v9  ;;  %v308_v21 = vmul.f32 %v550_v8, %v307_v19  ;;  %v313_v22 = vstv %s555_s20 }
  0x24   : > { %v305_v23 = vadd.f32 %v304_v18, %v289_v12  ;;  %v314_v24 = vmul.f32 %v554_v17, %v313_v22  ;;  %v317_v25 = vstv %s556_s21 }
  0x25   : > { %v309_v27 = vadd.f32 %v308_v21, %v295_v14  ;;  %v318_v28 = vmul.f32 %v554_v17, %v317_v25  ;;  %v321_v29 = vstv %s557_s22 }
  0x26   : > { %v315_v30 = vadd.f32 %v314_v24, %v301_v20  ;;  %v322_v31 = vmul.f32 %v554_v17, %v321_v29  ;;  %v327_v32 = vstv %s559_s23 }
  0x27   : > { %v319_v33 = vadd.f32 %v318_v28, %v305_v23  ;;  %v328_v34 = vmul.f32 %v558_v26, %v327_v32  ;;  %v331_v35 = vstv %s560_s24 }
  0x28   : > { %v323_v36 = vadd.f32 %v322_v31, %v309_v27  ;;  %v332_v37 = vmul.f32 %v558_v26, %v331_v35  ;;  %v335_v38 = vstv %s561_s25 }
  0x29   : > { %v329_v39 = vadd.f32 %v328_v34, %v315_v30  ;;  %v336_v40 = vmul.f32 %v558_v26, %v335_v38 }
  0x2a   : > { %v333_v41 = vadd.f32 %v332_v37, %v319_v33 }
  0x2b   : > { %v337_v42 = vadd.f32 %v336_v40, %v323_v36 }
  0x2c   : > { %v338_v43 = vmax.f32 %v329_v39, %v333_v41 }
  0x2e   : > { %v339_v44 = vmax.f32 %v338_v43, %v337_v42 }
  0x30   : > { %v340_v45 = vsub.f32 %v329_v39, %v339_v44  ;;  %v343_v46 = vsub.f32 %v333_v41, %v339_v44  ;;  %v346_v47 = vsub.f32 %v337_v42, %v339_v44 }
  0x32   : > { %v341_v48 = vmul.f32 1.442695, %v340_v45  ;;  %v344_v49 = vmul.f32 1.442695, %v343_v46  ;;  %v347_v50 = vmul.f32 1.442695, %v346_v47 }
  0x34   : > { %620 = vpow2.f32 %v341_v48 }
  0x35   : > { %622 = vpow2.f32 %v344_v49 }
  0x36   : > { %624 = vpow2.f32 %v347_v50 }
  0x3a   : > { %v621_v51 = vpop.eup %620 }
  0x3b   : > { %v623_v52 = vpop.eup %622 }
  0x3c   : > { %v625_v53 = vpop.eup %624  ;;  %v349_v54 = vadd.f32 %v623_v52, %v621_v51 }
  0x3e   : > { %v350_v55 = vadd.f32 %v625_v53, %v349_v54 }
  0x40   : > { %626 = vrcp.f32 %v350_v55 }
  0x46   : > { %v627_v56 = vpop.eup %626 }
  0x47   : > { %v352_v57 = vmul.f32 %v627_v56, %v350_v55 }
  0x49   : > { %v353_v58 = vsub.f32 2.0, %v352_v57 }
  0x4b   : > { %v354_v59 = vmul.f32 %v627_v56, %v353_v58 }
  0x4d   : > { %v355_v60 = vmul.f32 %v621_v51, %v354_v59  ;;  %v356_v61 = vmul.f32 %v623_v52, %v354_v59  ;;  %v357_v62 = vmul.f32 %v625_v53, %v354_v59 }
  0x4f   : > { %v358_v2 = vsub.f32 1.0, %v355_v60  ;;  %359 = vst [vmem:[%s276_s29] sm:$0x3] %v355_v60 }
  0x50   : > { %562 = vst [vmem:[%s276_s29 + $0x2] sm:$0x3] %v356_v61 }
  0x51   : > { %563 = vst [vmem:[%s276_s29 + $0x4] sm:$0x3] %v357_v62  ;;  %v365_v4 = vmul.f32 %v364_v63, %v358_v2  ;;  %v368_v5 = vmul.f32 %v564_v0, %v358_v2  ;;  %v372_v6 = vmul.f32 %v566_v1, %v358_v2  ;;  %v376_v7 = vmul.f32 %v568_v3, %v358_v2 }
  0x53   : > { %366 = vst [vmem:[%s268_s7] sm:$0x3] %v365_v4 }
  0x54   : > { %565 = vst [vmem:[%s268_s7 + $0x2] sm:$0x3] %v368_v5 }
  0x55   : > { %567 = vst [vmem:[%s268_s7 + $0x4] sm:$0x3] %v372_v6 }
  0x56   : > { %569 = vst [vmem:[%s268_s7 + $0x6] sm:$0x3] %v376_v7 }
  0x57 PF: > { %s17_s17 = sadd.s32 1, %s688_s17   ;;  %s802_s15 = smov %s684_s16 }
  0x58   : > { %p14_p8 = scmp.ge.s32.totalorder %s17_s17, 4   ;;  %s803_s16 = smov %s805_s19 }
  0x5a   :  { %16 = sbr.rel (!%p14_p8) target bundleno = 3 (0x3), region = 91 }
  0x5f   :  { %428 = vsyncpa [#allocation3], 1 }
  0x60   :  { %430 = vsyncpa [#allocation3 + $0x1], 1 }
  0x61   :  { %431 = vsyncpa [#allocation5], 1 }

</bundles_post_ra>
